<compile_context>
chip_gen: v6e
topology: v6e:2x2x1
jax: 0.10.0
libtpu: 0.0.40
codegen_flags: <defaults>
</compile_context>

<pallas_src>
import functools

import jax
import jax.numpy as jnp
from jax.experimental import pallas as pl
from jax.experimental.pallas import tpu as pltpu


_XLA_FALLBACK_MIN_FLOPS = 1 << 24  # below ~16 MFLOP a standalone call is overhead-bound


def _round_up(x: int, m: int) -> int:
    return ((x + m - 1) // m) * m


@functools.lru_cache(maxsize=None)
def _vmem_budget_bytes() -> int:
    """~3/4 of per-core VMEM: ~96 MiB on v5e/v6e (128 MiB), ~48 MiB on v7x (64 MiB)."""
    cap = 128 * 1024 * 1024
    try:
        info = pltpu.get_tpu_info()
        cap = int(getattr(info, "vmem_capacity_bytes", cap))
    except Exception:
        pass
    return (cap * 3) // 4


def prepare_linear_params(weight, bias, *, compute_dtype=jnp.bfloat16):
    """One-time parameter prep (call at init, NOT per forward).

    weight: (F_out, F_in) torch layout; bias: (F_out,).
    Returns (w_padded:(F_in, F_out_pad) compute_dtype, b_padded:(1, F_out_pad) f32, F_out).
    F_out is padded to a multiple of 128 so kernel stores are unmasked lane-dense vst.
    """
    f_out, f_in = weight.shape
    f_out_pad = _round_up(f_out, 128)
    w_p = jnp.zeros((f_in, f_out_pad), dtype=compute_dtype)
    w_p = w_p.at[:, :f_out].set(weight.T.astype(compute_dtype))
    b_p = jnp.zeros((1, f_out_pad), dtype=jnp.float32)
    b_p = b_p.at[0, :f_out].set(bias.astype(jnp.float32))
    return w_p, b_p, f_out


def _choose_tiles(M, F_in, F_out_pad, x_bytes, w_bytes, out_bytes, budget,
                  block_m=None, block_k=None):
    """Static (trace-time) tile selection with correct VMEM accounting."""
    # --- K (contraction) tile: keep W fully resident when it fits, else split
    # on a 128-aligned divisor of F_in (ragged K would let undefined padding
    # contaminate the accumulator, so divisibility is required).
    if block_k is not None:
        tk = block_k
    elif 2 * F_in * F_out_pad * w_bytes <= budget // 2:
        tk = F_in
    else:
        tk = F_in
        cand = (F_in // 128) * 128
        while cand >= 128:
            if F_in % cand == 0 and 2 * cand * F_out_pad * w_bytes <= budget // 2:
                tk = cand
                break
            cand -= 128
        # TODO(synk): if no 128-aligned divisor of F_in fits, W stays fully
        # resident; truly enormous layers additionally need an F_out grid axis.
    assert tk == F_in or (F_in % tk == 0 and tk % 128 == 0), (
        "block_k must equal F_in or be a 128-multiple divisor of F_in")

    # --- M (row) tile: multiple of 16 (bf16 sublane packing; harmless for f32),
    # as large as fits after the resident W / bias / accumulator are accounted.
    align = 16
    if block_m is not None:
        tm = block_m
    else:
        w_vmem = 2 * tk * F_out_pad * w_bytes       # default double-buffered W
        bias_vmem = 2 * 8 * F_out_pad * 4           # (1, Fp) block padded to 8 sublanes
        rem = max(0, budget - w_vmem - bias_vmem)
        per_row = 2 * tk * x_bytes + 2 * F_out_pad * out_bytes + F_out_pad * 4
        cap = max(align, (rem // max(per_row, 1)) // align * align)
        tm = min(1024, cap, _round_up(M, align))
        if tm >= 256:
            tm = (tm // 256) * 256                  # MXU-row friendly (256x256 MXU)
    assert tm >= 8 and tm % 8 == 0
    return tm, tk


def _linear_kernel(x_ref, w_ref, b_ref, o_ref, acc_ref):
    """(tm, tk) @ (tk, F_out_pad) MXU step; f32 accumulation across the K axis."""
    k = pl.program_id(1)

    @pl.when(k == 0)
    def _init():
        acc_ref[...] = jnp.zeros_like(acc_ref)

    w = w_ref[...]
    xv = x_ref[...]
    if xv.dtype != w.dtype:
        xv = xv.astype(w.dtype)  # bf16 cast in VMEM: no extra HBM pass over X
    acc_ref[...] += jnp.dot(xv, w, preferred_element_type=jnp.float32)

    @pl.when(k == pl.num_programs(1) - 1)
    def _finalize():
        o_ref[...] = (acc_ref[...] + b_ref[...]).astype(o_ref.dtype)


@functools.partial(jax.jit,
                   static_argnames=("f_out", "force_pallas", "block_m", "block_k"))
def linear_forward(x, w_padded, b_padded, *, f_out, force_pallas=False,
                   block_m=None, block_k=None):
    """x: (T, N, F_in); w_padded/b_padded from prepare_linear_params."""
    T, N, F_in = x.shape
    assert w_padded.shape[0] == F_in
    F_out_pad = w_padded.shape[1]
    M = T * N
    out_dtype = x.dtype
    x2d = x.reshape(M, F_in)
    last = x[-1]

    flops = 2 * M * F_in * F_out_pad
    if not force_pallas and flops < _XLA_FALLBACK_MIN_FLOPS:
        # Tiny problem: a standalone pallas_call is launch/per-step-overhead bound.
        xc = x2d if x2d.dtype == w_padded.dtype else x2d.astype(w_padded.dtype)
        out2d = (jnp.dot(xc, w_padded, preferred_element_type=jnp.float32)
                 + b_padded).astype(out_dtype)
        return out2d[:, :f_out].reshape(T, N, f_out), last

    x_bytes = jnp.dtype(x2d.dtype).itemsize
    w_bytes = jnp.dtype(w_padded.dtype).itemsize
    out_bytes = jnp.dtype(out_dtype).itemsize
    budget = _vmem_budget_bytes()

    tm, tk = _choose_tiles(M, F_in, F_out_pad, x_bytes, w_bytes, out_bytes,
                           budget, block_m, block_k)
    num_m = pl.cdiv(M, tm)      # ragged last row-tile is clamped by Pallas
    num_k = pl.cdiv(F_in, tk)   # exact when num_k > 1 (divisibility enforced)

    cost = pl.CostEstimate(
        flops=flops,
        transcendentals=0,
        bytes_accessed=(M * F_in * x_bytes
                        + F_in * F_out_pad * w_bytes * (num_m if num_k > 1 else 1)
                        + F_out_pad * 4
                        + M * F_out_pad * out_bytes),
    )

    out_p = pl.pallas_call(
        _linear_kernel,
        out_shape=jax.ShapeDtypeStruct((M, F_out_pad), out_dtype),
        grid=(num_m, num_k),
        in_specs=[
            pl.BlockSpec((tm, tk), lambda i, k: (i, k)),          # X: streamed row tiles
            pl.BlockSpec((tk, F_out_pad), lambda i, k: (k, 0)),   # W: resident when num_k==1
            pl.BlockSpec((1, F_out_pad), lambda i, k: (0, 0)),    # bias: resident
        ],
        out_specs=pl.BlockSpec((tm, F_out_pad), lambda i, k: (i, 0)),
        scratch_shapes=[pltpu.VMEM((tm, F_out_pad), jnp.float32)],  # f32 accumulator
        compiler_params=pltpu.CompilerParams(
            dimension_semantics=("parallel", "arbitrary"),  # rows sharded on v7x's 2 TCs
            vmem_limit_bytes=budget,
        ),
        cost_estimate=cost,
    )(x2d, w_padded, b_padded)

    out = out_p[:, :f_out].reshape(T, N, f_out)
    return out, last


if __name__ == "__main__":
    # Shapes consistent with the module's (num_times, num_samples, feat) input.
    T, N = 8, 4
    feat_input_size, feat_target_size = 32, 64

    key = jax.random.PRNGKey(0)
    kx, kw, kb, kx2, kw2, kb2 = jax.random.split(key, 6)

    x = jax.random.normal(kx, (T, N, feat_input_size), dtype=jnp.float32)
    bound = 1.0 / (feat_input_size ** 0.5)
    weight = jax.random.uniform(kw, (feat_target_size, feat_input_size),
                                minval=-bound, maxval=bound, dtype=jnp.float32)
    bias = jax.random.uniform(kb, (feat_target_size,),
                              minval=-bound, maxval=bound, dtype=jnp.float32)

    ref_out = (x.reshape(T * N, feat_input_size) @ weight.T + bias).reshape(
        T, N, feat_target_size)
    ref_last = x[-1]

    # --- exact f32-compute path (Pallas forced on despite the tiny shape) ---
    w32, b32, f_out = prepare_linear_params(weight, bias, compute_dtype=jnp.float32)
    out, last = linear_forward(x, w32, b32, f_out=f_out, force_pallas=True)
    jax.block_until_ready((out, last))
    assert out.shape == (T, N, feat_target_size)
    assert last.shape == (N, feat_input_size)
    assert jnp.allclose(out, ref_out, atol=1e-4, rtol=1e-4)
    assert jnp.allclose(last, ref_last)

    # --- default bf16-compute path (f32 accumulation), looser tolerance ---
    wbf, bbf, _ = prepare_linear_params(weight, bias)  # bf16 weights by default
    out_bf, last_bf = linear_forward(x, wbf, bbf, f_out=f_out, force_pallas=True)
    jax.block_until_ready((out_bf, last_bf))
    assert jnp.allclose(out_bf, ref_out, atol=2e-2, rtol=2e-2)
    assert jnp.allclose(last_bf, ref_last)

    # --- small-shape default policy: plain XLA dot fallback (no pallas_call) ---
    out_xla, _ = linear_forward(x, wbf, bbf, f_out=f_out)
    jax.block_until_ready(out_xla)
    assert jnp.allclose(out_xla, ref_out, atol=2e-2, rtol=2e-2)

    # --- K-split (two 128-wide K steps) + ragged-M (M=15) path, f32 compute ---
    T2, N2, fi2, fo2 = 3, 5, 256, 192
    x2 = jax.random.normal(kx2, (T2, N2, fi2), dtype=jnp.float32)
    bound2 = 1.0 / (fi2 ** 0.5)
    weight2 = jax.random.uniform(kw2, (fo2, fi2), minval=-bound2, maxval=bound2,
                                 dtype=jnp.float32)
    bias2 = jax.random.uniform(kb2, (fo2,), minval=-bound2, maxval=bound2,
                               dtype=jnp.float32)
    w2p, b2p, fo2_static = prepare_linear_params(weight2, bias2,
                                                 compute_dtype=jnp.float32)
    out2, last2 = linear_forward(x2, w2p, b2p, f_out=fo2_static,
                                 force_pallas=True, block_k=128)
    jax.block_until_ready((out2, last2))
    ref2 = (x2.reshape(T2 * N2, fi2) @ weight2.T + bias2).reshape(T2, N2, fo2)
    assert out2.shape == (T2, N2, fo2)
    assert jnp.allclose(out2, ref2, atol=1e-4, rtol=1e-4)
    assert jnp.allclose(last2, x2[-1])

    print("KERNEL_OK")
</pallas_src>

<mosaic_0001>
module attributes {stable_mosaic.version = 11 : i64} {
  func.func @_linear_kernel(%arg0: i32, %arg1: i32, %arg2: memref<32x32xf32, #tpu.memory_space<vmem>>, %arg3: memref<32x128xf32, #tpu.memory_space<vmem>>, %arg4: memref<1x128xf32, #tpu.memory_space<vmem>>, %arg5: memref<32x128xf32, #tpu.memory_space<vmem>>, %arg6: memref<32x128xf32, #tpu.memory_space<vmem>>) attributes {dimension_semantics = [#tpu.dimension_semantics<parallel>, #tpu.dimension_semantics<arbitrary>], iteration_bounds = array<i64: 1, 1>, scalar_prefetch = 0 : i64, scratch_operands = 1 : i64, tpu.core_type = #tpu.core_type<tc>, window_params = [{transform_indices = @transform_0, window_bounds = array<i64: 32, 32>}, {transform_indices = @transform_1, window_bounds = array<i64: 32, 128>}, {pipeline_mode = #tpu.pipeline_mode<synchronous>, transform_indices = @transform_2, window_bounds = array<i64: 1, 128>}, {transform_indices = @transform_3, window_bounds = array<i64: 32, 128>}]} {
    %c0_i32 = arith.constant 0 : i32
    %0 = arith.cmpi eq, %arg1, %c0_i32 : i32
    %1 = arith.extui %0 : i1 to i32
    %c0_i32_0 = arith.constant 0 : i32
    %2 = arith.cmpi ne, %1, %c0_i32_0 : i32
    scf.if %2 {
      %cst_10 = arith.constant 0.000000e+00 : f32
      %12 = vector.broadcast %cst_10 : f32 to vector<32x128xf32>
      %c0_11 = arith.constant 0 : index
      %c0_12 = arith.constant 0 : index
      %13 = vector.load %arg6[%c0_11, %c0_12] : memref<32x128xf32, #tpu.memory_space<vmem>>, vector<32x128xf32>
      tpu.vector_store %arg6[%c0_11, %c0_12], %12 {strides = array<i32>} : memref<32x128xf32, #tpu.memory_space<vmem>>, vector<32x128xf32>,
    } else {
    }
    %c0 = arith.constant 0 : index
    %c0_1 = arith.constant 0 : index
    %3 = vector.load %arg3[%c0, %c0_1] : memref<32x128xf32, #tpu.memory_space<vmem>>, vector<32x128xf32>
    %c0_2 = arith.constant 0 : index
    %c0_3 = arith.constant 0 : index
    %4 = vector.load %arg2[%c0_2, %c0_3] : memref<32x32xf32, #tpu.memory_space<vmem>>, vector<32x32xf32>
    %c0_4 = arith.constant 0 : index
    %c0_5 = arith.constant 0 : index
    %5 = vector.load %arg6[%c0_4, %c0_5] : memref<32x128xf32, #tpu.memory_space<vmem>>, vector<32x128xf32>
    %cst = arith.constant dense<0.000000e+00> : vector<32x128xf32>
    %6 = tpu.matmul %4, %3, %cst {dimension_numbers = #tpu.dot_dimension_numbers<[1], [0], [0], [1], [0, 0, 1, 1], [], []>} : vector<32x32xf32>, vector<32x128xf32>, vector<32x128xf32> -> vector<32x128xf32>
    %7 = arith.addf %5, %6 : vector<32x128xf32>
    %c0_6 = arith.constant 0 : index
    %c0_7 = arith.constant 0 : index
    %8 = vector.load %arg6[%c0_6, %c0_7] : memref<32x128xf32, #tpu.memory_space<vmem>>, vector<32x128xf32>
    tpu.vector_store %arg6[%c0_6, %c0_7], %7 {strides = array<i32>} : memref<32x128xf32, #tpu.memory_space<vmem>>, vector<32x128xf32>,
    %c0_i32_8 = arith.constant 0 : i32
    %9 = arith.cmpi eq, %arg1, %c0_i32_8 : i32
    %10 = arith.extui %9 : i1 to i32
    %c0_i32_9 = arith.constant 0 : i32
    %11 = arith.cmpi ne, %10, %c0_i32_9 : i32
    scf.if %11 {
      %c0_10 = arith.constant 0 : index
      %c0_11 = arith.constant 0 : index
      %12 = vector.load %arg6[%c0_10, %c0_11] : memref<32x128xf32, #tpu.memory_space<vmem>>, vector<32x128xf32>
      %c0_12 = arith.constant 0 : index
      %c0_13 = arith.constant 0 : index
      %13 = vector.load %arg4[%c0_12, %c0_13] : memref<1x128xf32, #tpu.memory_space<vmem>>, vector<1x128xf32>
      %14 = vector.broadcast %13 : vector<1x128xf32> to vector<32x128xf32>
      %15 = arith.addf %12, %14 : vector<32x128xf32>
      %c0_14 = arith.constant 0 : index
      %c0_15 = arith.constant 0 : index
      %16 = vector.load %arg5[%c0_14, %c0_15] : memref<32x128xf32, #tpu.memory_space<vmem>>, vector<32x128xf32>
      tpu.vector_store %arg5[%c0_14, %c0_15], %15 {strides = array<i32>} : memref<32x128xf32, #tpu.memory_space<vmem>>, vector<32x128xf32>,
    } else {
    }
    return
  }
  func.func @transform_0(%arg0: i32, %arg1: i32) -> (i32, i32) {
    %c0_i32 = arith.constant 0 : i32
    return %arg0, %arg1 : i32, i32
  }
  func.func @transform_1(%arg0: i32, %arg1: i32) -> (i32, i32) {
    %c0_i32 = arith.constant 0 : i32
    %c0_i32_0 = arith.constant 0 : i32
    return %arg1, %c0_i32 : i32, i32
  }
  func.func @transform_2(%arg0: i32, %arg1: i32) -> (i32, i32) {
    %c0_i32 = arith.constant 0 : i32
    %c0_i32_0 = arith.constant 0 : i32
    %c0_i32_1 = arith.constant 0 : i32
    return %c0_i32, %c0_i32_0 : i32, i32
  }
  func.func @transform_3(%arg0: i32, %arg1: i32) -> (i32, i32) {
    %c0_i32 = arith.constant 0 : i32
    %c0_i32_0 = arith.constant 0 : i32
    return %arg0, %c0_i32 : i32, i32
  }
}

</mosaic_0001>

<bundles_post_ra>
// kernel: linear_forward.1
= control target key start
LH: loop header
LB: loop body
LE: loop exit
PB: predicated region body
PF: predicated region fallthrough
CT: control target
= control target key end

     0   :  { %8 = vsyncpa [#allocation4], 0  ;;  %s361_s0 = inlined_call_operand.hbm [shape: f32[32,32], index: 0, kind: input, shape index: {}]   ;;  %s362_s1 = inlined_call_operand.hbm [shape: f32[32,128], index: 1, kind: input, shape index: {}]   ;;  %s363_s2 = inlined_call_operand.vmem [shape: f32[1,128], index: 2, kind: input, shape index: {}]   ;;  %s364_s3 = inlined_call_operand.hbm [shape: f32[32,128], index: 3, kind: output, shape index: {}]  }
   0x1   :  { %9 = vsyncpa [#allocation7], 0 }
   0x2   :  { %10 = vsyncpa [#allocation5], 0  ;;  %s315_s12 = smov [#allocation3]  }
   0x3   :  { %s16_s13 = sshll.u32 %s315_s12, 4  ;;  %s17_s13 = int_to_ptr.vmem [resolvable:$true] %s16_s13 }
   0x4   :  { %s257_s14 = scalar_lea.vmem %s17_s13, 512  ;;  %p262_p1 = scmp.lt.s32.totalorder %s17_s13, %s17_s13 }
   0x5   :  { %p258_p0 = scmp.ne.s32.totalorder %s17_s13, %s257_s14  ;;  %p263_p2 = scmp.lt.s32.totalorder %s257_s14, %s257_s14 }
   0x7   :  { %p264_p3 = por %p263_p2, %p262_p1 }
   0x9   :  { %p265_p4 = pnand %p264_p3, %p258_p0 }
   0xb   :  { %268 = shalt.err (!%p265_p4)
}
   0xc   :  { %s316_s15 = smov 128   ;;  %s317_s16 = smov 8  }
   0xd   :  { %22 = dma.hbm_to_vmem [thread:$0]  %s361_s0, 512, %s17_s13, [#allocation4], %s316_s15, %s316_s15, %s317_s16  }
   0xe   :  { %s318_s19 = smov [#allocation6]  }
   0xf   :  { %s28_s20 = sshll.u32 %s318_s19, 4  ;;  %s29_s20 = int_to_ptr.vmem [resolvable:$true] %s28_s20 }
  0x10   :  { %s277_s21 = scalar_lea.vmem %s29_s20, 512  ;;  %p282_p6 = scmp.lt.s32.totalorder %s29_s20, %s29_s20 }
  0x11   :  { %p278_p5 = scmp.ne.s32.totalorder %s29_s20, %s277_s21  ;;  %p283_p7 = scmp.lt.s32.totalorder %s277_s21, %s277_s21 }
  0x13   :  { %p284_p8 = por %p283_p7, %p282_p6 }
  0x15   :  { %p285_p9 = pnand %p284_p8, %p278_p5 }
  0x17   :  { %288 = shalt.err (!%p285_p9)
}
  0x18   :  { %34 = dma.hbm_to_vmem [thread:$0]  %s362_s1, 512, %s29_s20, [#allocation7], %s316_s15, %s316_s15, %s317_s16  }
  0x19   :  { %309 = dma.done.wait [#allocation4], 512  }
  0x1a   :  { %310 = vsyncadd [#allocation4], 4294966784 }
  0x1b   :  { %311 = dma.done.wait [#allocation7], 512  }
  0x1c   :  { %312 = vsyncadd [#allocation7], 4294966784  ;;  %v54_v0 = vld [vmem:[#allocation6 + $0x18] sm:$0xff]  ;;  %v53_v1 = vld [vmem:[#allocation6 + $0x10] sm:$0xff]  ;;  %vm63_vm0 = vcmask 261120   ;;  %s319_s24 = smov [#allocation8]  }
  0x1d   :  { %222 = vmatprep.subr.mxu0 %v54_v0  ;;  %236 = vmatprep.subr.mxu1 %v54_v0  ;;  %v52_v2 = vld [vmem:[#allocation6 + $0x8] sm:$0xff]  ;;  %v51_v3 = vld [vmem:[#allocation6] sm:$0xff]  ;;  %v57_v5 = vld [vmem:[#allocation3 + $0x10] sm:$0xff]  ;;  %s196_s25 = sshll.u32 %s319_s24, 4  ;;  %s197_s25 = int_to_ptr.vmem [resolvable:$true] %s196_s25 }
  0x1e   :  { %223 = vmatpush3.msra.mxu0 %v54_v0  ;;  %240 = vmatpush3.msra.mxu1 %v54_v0  ;;  %v55_v4 = vld [vmem:[#allocation3] sm:$0xff]  ;;  %v56_v6 = vld [vmem:[#allocation3 + $0x8] sm:$0xff]  ;;  %v58_v7 = vld [vmem:[#allocation3 + $0x18] sm:$0xff]  ;;  %s289_s26 = scalar_lea.vmem %s197_s25, 512  ;;  %p294_p11 = scmp.lt.s32.totalorder %s197_s25, %s197_s25 }
  0x1f   :  { %224 = vmatprep.subr.mxu0 %v53_v1  ;;  %237 = vmatprep.subr.mxu1 %v53_v1  ;;  %v213_v8 = vld [vmem:[%s363_s2] ss:$0 sm:$0xff]  ;;  %p290_p10 = scmp.ne.s32.totalorder %s197_s25, %s289_s26  ;;  %p295_p12 = scmp.lt.s32.totalorder %s289_s26, %s289_s26 }
  0x20   :  { %225 = vmatpush3.msra.mxu0 %v53_v1  ;;  %241 = vmatpush3.msra.mxu1 %v53_v1 }
  0x21   :  { %226 = vmatprep.subr.mxu0 %v52_v2  ;;  %238 = vmatprep.subr.mxu1 %v52_v2  ;;  %p296_p13 = por %p295_p12, %p294_p11 }
  0x22   :  { %227 = vmatpush3.msra.mxu0 %v52_v2  ;;  %242 = vmatpush3.msra.mxu1 %v52_v2 }
  0x23   :  { %228 = vmatprep.subr.mxu0 %v51_v3  ;;  %239 = vmatprep.subr.mxu1 %v51_v3  ;;  %p297_p0 = pnand %p296_p13, %p290_p10 }
  0x24   :  { %229 = vmatpush3.msra.mxu0 %v51_v3  ;;  %243 = vmatpush3.msra.mxu1 %v51_v3 }
  0x25   :  { %230 = vmatprep.mubr.msk.f32.mxu0 %vm63_vm0, %v55_v4  ;;  %233 = vmatprep.mubr.msk.f32.mxu1 %vm63_vm0, %v57_v5 }
  0x26   :  { %231 = vmatmul.mubr.msk.f32.vlgmr.msra.gmra.mxu0 %vm63_vm0, %v56_v6  ;;  %234 = vmatmul.mubr.msk.f32.vlgmr.msra.gmra.mxu1 %vm63_vm0, %v58_v7 }
  0xe6   :  { %v232_v9 = vpop.f32.mrf.mxu0  ;;  %v235_v10 = vpop.f32.mrf.mxu1 }
  0xe7   :  { %v184_v11 = vadd.f32 %v232_v9, %v213_v8  ;;  %v186_v12 = vadd.f32 %v235_v10, %v213_v8 }
  0xe8   :  { %v142_v13 = vpop.f32.mrf.mxu0  ;;  %v152_v14 = vpop.f32.mrf.mxu1 }
  0xe9   :  { %188 = vst [vmem:[#allocation8 + $0x8] sm:$0xff] %v184_v11  ;;  %190 = vst [vmem:[#allocation8 + $0x18] sm:$0xff] %v186_v12  ;;  %v183_v15 = vadd.f32 %v213_v8, %v142_v13  ;;  %v185_v16 = vadd.f32 %v213_v8, %v152_v14 }
  0xeb   :  { %187 = vst [vmem:[#allocation8] sm:$0xff] %v183_v15  ;;  %189 = vst [vmem:[#allocation8 + $0x10] sm:$0xff] %v185_v16 }
  0xec   :  { %300 = shalt.err (!%p297_p0)
}
  0xed   :  { %202 = dma.vmem_to_hbm [thread:$0]  %s197_s25, 512, %s364_s3, [#allocation5], %s316_s15, %s316_s15, %s317_s16  }
  0xee   :  { %313 = dma.done.wait [#allocation5], 512  }
  0xef   :  { %314 = vsyncadd [#allocation5], 4294966784 }
  0xf0   :  { %206 = vsyncpa [#allocation4], 1 }
  0xf1   :  { %207 = vsyncpa [#allocation7], 1 }
  0xf2   :  { %208 = vsyncpa [#allocation5], 1 }

</bundles_post_ra>
